<compile_context>
chip_gen: v7x
topology: tpu7x:2x2x1
jax: 0.10.0
libtpu: 0.0.40
codegen_flags: <defaults>
</compile_context>

<pallas_src>
import functools

import jax
import jax.numpy as jnp
from jax.experimental import pallas as pl
from jax.experimental.pallas import tpu as pltpu

_LANE = 128
_SUBLANE = 8


def _round_up(x, m):
    return ((x + m - 1) // m) * m


def _mlt_mlp_kernel(c1, c2, x_ref, w1_ref, b1_ref, wh_ref, bh_ref, out1_ref, out2_ref):
    # fc1 (MXU) + bias + ReLU; accumulation and elementwise epilogue in f32.
    h = jnp.dot(x_ref[...], w1_ref[...], preferred_element_type=jnp.float32)
    h = jnp.maximum(h + b1_ref[...], 0.0)
    # dropout (eval mode) -> identity.
    h = h.astype(wh_ref.dtype)
    # Fused [task1 | task2] head: ONE matmul over the lane-padded weight.
    o = jnp.dot(h, wh_ref[...], preferred_element_type=jnp.float32) + bh_ref[...]
    # Narrow, direct writebacks (real columns only; padded lanes are exactly zero anyway).
    out1_ref[...] = o[:, :c1].astype(out1_ref.dtype)
    out2_ref[...] = o[:, c1:c1 + c2].astype(out2_ref.dtype)


def prepare_mlt_mlp_params(w1, b1, wt1, bt1, wt2, bt2, *, compute_dtype=jnp.bfloat16):
    """Call-invariant layout prep, done once at parameter-load time.

    w1:  [in, hid] (pre-transposed), b1: [1, hid]
    wt*: [hid, c*] (pre-transposed), bt*: [1, c*]
    Zero-pads lane dims to 128 (exact: zero cols + ReLU(0)=0) and fuses the two heads.
    """
    in_size, hid = w1.shape
    c1 = int(wt1.shape[1])
    c2 = int(wt2.shape[1])
    hid_p = _round_up(hid, _LANE)
    head_p = _round_up(c1 + c2, _LANE)

    w1_p = jnp.zeros((in_size, hid_p), jnp.float32).at[:, :hid].set(w1)
    b1_p = jnp.zeros((1, hid_p), jnp.float32).at[:, :hid].set(b1)
    wh = jnp.concatenate([wt1, wt2], axis=1)            # [hid, c1+c2]
    bh = jnp.concatenate([bt1, bt2], axis=1)            # [1,   c1+c2]
    wh_p = jnp.zeros((hid_p, head_p), jnp.float32).at[:hid, :c1 + c2].set(wh)
    bh_p = jnp.zeros((1, head_p), jnp.float32).at[:, :c1 + c2].set(bh)

    return dict(
        w1=w1_p.astype(compute_dtype),   # low-precision MXU feed
        b1=b1_p,                         # f32 epilogue
        wh=wh_p.astype(compute_dtype),
        bh=bh_p,
        c1=c1,
        c2=c2,
    )


@functools.partial(jax.jit, static_argnames=("c1", "c2", "tile_m"))
def _forward_impl(x, w1, b1, wh, bh, *, c1, c2, tile_m):
    B, in_size = x.shape
    hid_p = w1.shape[1]
    head_p = wh.shape[1]

    # Cast x to the compute dtype (bf16 default): halves the x HBM stream.
    x_c = x.astype(w1.dtype)

    # Batch tile: big enough to amortize per-step overhead; >= 2 grid steps when B
    # permits (so both v7x TensorCores pull HBM concurrently); multiple of 8 sublanes.
    tile = min(tile_m, _round_up(B, _SUBLANE))
    if B >= 2 * _SUBLANE:
        tile = min(tile, _round_up(pl.cdiv(B, 2), _SUBLANE))
    tile = max(_SUBLANE, _round_up(tile, _SUBLANE))
    grid = (pl.cdiv(B, tile),)   # ragged last block: OOB rows never written, no x-pad pass

    cost = pl.CostEstimate(
        flops=2 * B * (in_size * hid_p + hid_p * head_p),
        transcendentals=0,
        bytes_accessed=(x_c.size * x_c.dtype.itemsize
                        + w1.size * w1.dtype.itemsize
                        + wh.size * wh.dtype.itemsize
                        + b1.size * 4 + bh.size * 4
                        + B * (c1 + c2) * 4),
    )

    out1, out2 = pl.pallas_call(
        functools.partial(_mlt_mlp_kernel, c1, c2),
        out_shape=(jax.ShapeDtypeStruct((B, c1), jnp.float32),
                   jax.ShapeDtypeStruct((B, c2), jnp.float32)),
        grid=grid,
        in_specs=[
            pl.BlockSpec((tile, in_size), lambda i: (i, 0)),    # x: batch-tiled
            pl.BlockSpec((in_size, hid_p), lambda i: (0, 0)),   # w1: VMEM-resident
            pl.BlockSpec((1, hid_p), lambda i: (0, 0)),         # b1
            pl.BlockSpec((hid_p, head_p), lambda i: (0, 0)),    # fused head weight
            pl.BlockSpec((1, head_p), lambda i: (0, 0)),        # fused head bias
        ],
        out_specs=(pl.BlockSpec((tile, c1), lambda i: (i, 0)),
                   pl.BlockSpec((tile, c2), lambda i: (i, 0))),
        compiler_params=pltpu.CompilerParams(
            dimension_semantics=("parallel",),
            vmem_limit_bytes=32 << 20,
        ),
        cost_estimate=cost,
    )(x_c, w1, b1, wh, bh)
    return out1, out2


def mlt_mlp_forward(x, params, *, tile_m=4096):
    """Forward pass of mltMLP. x: [B, in]. Returns (out_task1 [B,c1], out_task2 [B,c2]) f32."""
    return _forward_impl(x, params["w1"], params["b1"], params["wh"], params["bh"],
                         c1=params["c1"], c2=params["c2"], tile_m=tile_m)


def _init_linear(key, fan_in, fan_out):
    # Mimic PyTorch nn.Linear default init: U(-1/sqrt(fan_in), 1/sqrt(fan_in)).
    kw, kb = jax.random.split(key)
    bound = 1.0 / jnp.sqrt(float(fan_in))
    w = jax.random.uniform(kw, (fan_in, fan_out), jnp.float32, -bound, bound)  # pre-transposed
    b = jax.random.uniform(kb, (1, fan_out), jnp.float32, -bound, bound)
    return w, b


def _reference_forward(x, w1, b1, wt1, bt1, wt2, bt2):
    h = jnp.maximum(x @ w1 + b1, 0.0)
    return h @ wt1 + bt1, h @ wt2 + bt2


if __name__ == "__main__":
    batch = 8
    input_size = 32
    hidden_size = 64
    num_classes_task1 = 5
    num_classes_task2 = 3

    root = jax.random.PRNGKey(0)
    k_x, k_fc1, k_t1, k_t2, k_x2 = jax.random.split(root, 5)

    x = jax.random.normal(k_x, (batch, input_size), jnp.float32)
    w1, b1 = _init_linear(k_fc1, input_size, hidden_size)
    wt1, bt1 = _init_linear(k_t1, hidden_size, num_classes_task1)
    wt2, bt2 = _init_linear(k_t2, hidden_size, num_classes_task2)

    ref1, ref2 = _reference_forward(x, w1, b1, wt1, bt1, wt2, bt2)

    # Recommended (default) bf16 compute path — precision-limited tolerance.
    params_bf16 = prepare_mlt_mlp_params(w1, b1, wt1, bt1, wt2, bt2)
    out1, out2 = mlt_mlp_forward(x, params_bf16)
    jax.block_until_ready((out1, out2))
    assert out1.shape == (batch, num_classes_task1)
    assert out2.shape == (batch, num_classes_task2)
    assert jnp.allclose(out1, ref1, atol=5e-2, rtol=5e-2)
    assert jnp.allclose(out2, ref2, atol=5e-2, rtol=5e-2)

    # f32 compute path — numerically exact vs the reference.
    params_f32 = prepare_mlt_mlp_params(w1, b1, wt1, bt1, wt2, bt2,
                                        compute_dtype=jnp.float32)
    o1f, o2f = mlt_mlp_forward(x, params_f32)
    jax.block_until_ready((o1f, o2f))
    assert jnp.allclose(o1f, ref1, atol=1e-5, rtol=1e-5)
    assert jnp.allclose(o2f, ref2, atol=1e-5, rtol=1e-5)

    # Ragged batch + multi-step grid path (no explicit x padding): B=20, tile=8 -> 3 steps.
    x2 = jax.random.normal(k_x2, (20, input_size), jnp.float32)
    r1, r2 = _reference_forward(x2, w1, b1, wt1, bt1, wt2, bt2)
    p1, p2 = mlt_mlp_forward(x2, params_f32, tile_m=8)
    jax.block_until_ready((p1, p2))
    assert p1.shape == (20, num_classes_task1) and p2.shape == (20, num_classes_task2)
    assert jnp.allclose(p1, r1, atol=1e-5, rtol=1e-5)
    assert jnp.allclose(p2, r2, atol=1e-5, rtol=1e-5)

    print("KERNEL_OK")
</pallas_src>

<mosaic_0001>
module attributes {stable_mosaic.version = 11 : i64} {
  func.func @_mlt_mlp_kernel(%arg0: i32, %arg1: memref<8x32xbf16, #tpu.memory_space<vmem>>, %arg2: memref<32x128xbf16, #tpu.memory_space<vmem>>, %arg3: memref<1x128xf32, #tpu.memory_space<vmem>>, %arg4: memref<128x128xbf16, #tpu.memory_space<vmem>>, %arg5: memref<1x128xf32, #tpu.memory_space<vmem>>, %arg6: memref<8x5xf32, #tpu.memory_space<vmem>>, %arg7: memref<8x3xf32, #tpu.memory_space<vmem>>) attributes {dimension_semantics = [#tpu.dimension_semantics<parallel>], iteration_bounds = array<i64: 1>, scalar_prefetch = 0 : i64, scratch_operands = 0 : i64, tpu.core_type = #tpu.core_type<tc>, window_params = [{transform_indices = @transform_0, window_bounds = array<i64: 8, 32>}, {pipeline_mode = #tpu.pipeline_mode<synchronous>, transform_indices = @transform_1, window_bounds = array<i64: 32, 128>}, {pipeline_mode = #tpu.pipeline_mode<synchronous>, transform_indices = @transform_2, window_bounds = array<i64: 1, 128>}, {pipeline_mode = #tpu.pipeline_mode<synchronous>, transform_indices = @transform_3, window_bounds = array<i64: 128, 128>}, {pipeline_mode = #tpu.pipeline_mode<synchronous>, transform_indices = @transform_4, window_bounds = array<i64: 1, 128>}, {transform_indices = @transform_5, window_bounds = array<i64: 8, 5>}, {transform_indices = @transform_6, window_bounds = array<i64: 8, 3>}]} {
    %c0 = arith.constant 0 : index
    %c0_0 = arith.constant 0 : index
    %0 = vector.load %arg1[%c0, %c0_0] : memref<8x32xbf16, #tpu.memory_space<vmem>>, vector<8x32xbf16>
    %c0_1 = arith.constant 0 : index
    %c0_2 = arith.constant 0 : index
    %1 = vector.load %arg2[%c0_1, %c0_2] : memref<32x128xbf16, #tpu.memory_space<vmem>>, vector<32x128xbf16>
    %cst = arith.constant dense<0.000000e+00> : vector<8x128xf32>
    %2 = tpu.matmul %0, %1, %cst {dimension_numbers = #tpu.dot_dimension_numbers<[1], [0], [0], [1], [0, 0, 1, 1], [], []>} : vector<8x32xbf16>, vector<32x128xbf16>, vector<8x128xf32> -> vector<8x128xf32>
    %c0_3 = arith.constant 0 : index
    %c0_4 = arith.constant 0 : index
    %3 = vector.load %arg3[%c0_3, %c0_4] : memref<1x128xf32, #tpu.memory_space<vmem>>, vector<1x128xf32>
    %4 = vector.broadcast %3 : vector<1x128xf32> to vector<8x128xf32>
    %5 = arith.addf %2, %4 : vector<8x128xf32>
    %cst_5 = arith.constant 0.000000e+00 : f32
    %6 = vector.broadcast %cst_5 : f32 to vector<8x128xf32>
    %7 = arith.maximumf %5, %6 : vector<8x128xf32>
    %8 = arith.truncf %7 : vector<8x128xf32> to vector<8x128xbf16>
    %c0_6 = arith.constant 0 : index
    %c0_7 = arith.constant 0 : index
    %9 = vector.load %arg4[%c0_6, %c0_7] : memref<128x128xbf16, #tpu.memory_space<vmem>>, vector<128x128xbf16>
    %cst_8 = arith.constant dense<0.000000e+00> : vector<8x128xf32>
    %10 = tpu.matmul %8, %9, %cst_8 {dimension_numbers = #tpu.dot_dimension_numbers<[1], [0], [0], [1], [0, 0, 1, 1], [], []>} : vector<8x128xbf16>, vector<128x128xbf16>, vector<8x128xf32> -> vector<8x128xf32>
    %c0_9 = arith.constant 0 : index
    %c0_10 = arith.constant 0 : index
    %11 = vector.load %arg5[%c0_9, %c0_10] : memref<1x128xf32, #tpu.memory_space<vmem>>, vector<1x128xf32>
    %12 = vector.broadcast %11 : vector<1x128xf32> to vector<8x128xf32>
    %13 = arith.addf %10, %12 : vector<8x128xf32>
    %14 = vector.extract_strided_slice %13 {offsets = [0, 0], sizes = [8, 5], strides = [1, 1]} : vector<8x128xf32> to vector<8x5xf32>
    %c0_11 = arith.constant 0 : index
    %c0_12 = arith.constant 0 : index
    %15 = vector.load %arg6[%c0_11, %c0_12] : memref<8x5xf32, #tpu.memory_space<vmem>>, vector<8x5xf32>
    tpu.vector_store %arg6[%c0_11, %c0_12], %14 {strides = array<i32>} : memref<8x5xf32, #tpu.memory_space<vmem>>, vector<8x5xf32>,
    %16 = vector.extract_strided_slice %13 {offsets = [0, 5], sizes = [8, 3], strides = [1, 1]} : vector<8x128xf32> to vector<8x3xf32>
    %c0_13 = arith.constant 0 : index
    %c0_14 = arith.constant 0 : index
    %17 = vector.load %arg7[%c0_13, %c0_14] : memref<8x3xf32, #tpu.memory_space<vmem>>, vector<8x3xf32>
    tpu.vector_store %arg7[%c0_13, %c0_14], %16 {strides = array<i32>} : memref<8x3xf32, #tpu.memory_space<vmem>>, vector<8x3xf32>,
    return
  }
  func.func @transform_0(%arg0: i32) -> (i32, i32) {
    %c0_i32 = arith.constant 0 : i32
    %c0_i32_0 = arith.constant 0 : i32
    return %arg0, %c0_i32 : i32, i32
  }
  func.func @transform_1(%arg0: i32) -> (i32, i32) {
    %c0_i32 = arith.constant 0 : i32
    %c0_i32_0 = arith.constant 0 : i32
    %c0_i32_1 = arith.constant 0 : i32
    return %c0_i32, %c0_i32_0 : i32, i32
  }
  func.func @transform_2(%arg0: i32) -> (i32, i32) {
    %c0_i32 = arith.constant 0 : i32
    %c0_i32_0 = arith.constant 0 : i32
    %c0_i32_1 = arith.constant 0 : i32
    return %c0_i32, %c0_i32_0 : i32, i32
  }
  func.func @transform_3(%arg0: i32) -> (i32, i32) {
    %c0_i32 = arith.constant 0 : i32
    %c0_i32_0 = arith.constant 0 : i32
    %c0_i32_1 = arith.constant 0 : i32
    return %c0_i32, %c0_i32_0 : i32, i32
  }
  func.func @transform_4(%arg0: i32) -> (i32, i32) {
    %c0_i32 = arith.constant 0 : i32
    %c0_i32_0 = arith.constant 0 : i32
    %c0_i32_1 = arith.constant 0 : i32
    return %c0_i32, %c0_i32_0 : i32, i32
  }
  func.func @transform_5(%arg0: i32) -> (i32, i32) {
    %c0_i32 = arith.constant 0 : i32
    %c0_i32_0 = arith.constant 0 : i32
    return %arg0, %c0_i32 : i32, i32
  }
  func.func @transform_6(%arg0: i32) -> (i32, i32) {
    %c0_i32 = arith.constant 0 : i32
    %c0_i32_0 = arith.constant 0 : i32
    return %arg0, %c0_i32 : i32, i32
  }
}

</mosaic_0001>

<bundles_post_ra>
// kernel: _forward_impl.1
= control target key start
LH: loop header
LB: loop body
LE: loop exit
PB: predicated region body
PF: predicated region fallthrough
CT: control target
= control target key end

     0   :  { %12 = vsyncpa [#allocation3], 0  ;;  %s495_s0 = inlined_call_operand.vmem [shape: bf16[8,32], index: 0, kind: input, shape index: {}]   ;;  %s496_s1 = inlined_call_operand.hbm [shape: bf16[32,128], index: 1, kind: input, shape index: {}]   ;;  %s497_s2 = inlined_call_operand.vmem [shape: f32[1,128], index: 2, kind: input, shape index: {}]   ;;  %s498_s3 = inlined_call_operand.hbm [shape: bf16[128,128], index: 3, kind: input, shape index: {}]   ;;  %s499_s4 = inlined_call_operand.vmem [shape: f32[1,128], index: 4, kind: input, shape index: {}]   ;;  %s500_s5 = inlined_call_operand.hbm [shape: f32[8,5], index: 5, kind: output, shape index: {0}]   ;;  %s501_s6 = inlined_call_operand.vmem [shape: f32[8,3], index: 6, kind: output, shape index: {1}]  }
   0x1   :  { %13 = vsyncpa [#allocation6], 0 }
   0x2   :  { %14 = vsyncpa [#allocation4], 0  ;;  %s404_s21 = smov [#allocation2]   ;;  %s332_s25 = scalar_lea.hbm %s496_s1, 256 }
   0x3   :  { %s22_s22 = sshll.u32 %s404_s21, 4  ;;  %p333_p0 = scmp.ne.s32.totalorder %s496_s1, %s332_s25  ;;  %s23_s22 = int_to_ptr.vmem [resolvable:$true] %s22_s22 }
   0x4   :  { %p336_p1 = scmp.lt.u32.totalorder %s332_s25, %s496_s1 }
   0x6   :  { %p338_p2 = pnand %p336_p1, %p333_p0 }
   0x8   :  { %341 = shalt.err (!%p338_p2)
}
   0x9   :  { %s342_s30 = scalar_lea.vmem %s23_s22, 256  ;;  %p347_p4 = scmp.lt.s32.totalorder %s23_s22, %s23_s22 }
   0xa   :  { %p343_p3 = scmp.ne.s32.totalorder %s23_s22, %s342_s30  ;;  %p348_p5 = scmp.lt.s32.totalorder %s342_s30, %s342_s30 }
   0xc   :  { %p349_p6 = por %p348_p5, %p347_p4 }
   0xe   :  { %p350_p7 = pnand %p349_p6, %p343_p3 }
  0x10   :  { %353 = shalt.err (!%p350_p7)
}
  0x11   :  { %s405_s7 = smov 64   ;;  %s406_s8 = smov 4  }
  0x12   :  { %28 = dma.hbm_to_vmem [thread:$0]  %s496_s1, 256, %s23_s22, [#allocation3], %s405_s7, %s405_s7, %s406_s8  }
  0x13   :  { %s407_s11 = smov [#allocation5]   ;;  %s354_s15 = scalar_lea.hbm %s498_s3, 1024 }
  0x14   :  { %s36_s12 = sshll.u32 %s407_s11, 4  ;;  %p355_p8 = scmp.ne.s32.totalorder %s498_s3, %s354_s15  ;;  %s37_s12 = int_to_ptr.vmem [resolvable:$true] %s36_s12 }
  0x15   :  { %p358_p9 = scmp.lt.u32.totalorder %s354_s15, %s498_s3 }
  0x17   :  { %p360_p10 = pnand %p358_p9, %p355_p8 }
  0x19   :  { %363 = shalt.err (!%p360_p10)
}
  0x1a   :  { %s364_s20 = scalar_lea.vmem %s37_s12, 1024  ;;  %p369_p12 = scmp.lt.s32.totalorder %s37_s12, %s37_s12 }
  0x1b   :  { %p365_p11 = scmp.ne.s32.totalorder %s37_s12, %s364_s20  ;;  %p370_p13 = scmp.lt.s32.totalorder %s364_s20, %s364_s20 }
  0x1d   :  { %p371_p0 = por %p370_p13, %p369_p12 }
  0x1f   :  { %p372_p1 = pnand %p371_p0, %p365_p11 }
  0x21   :  { %375 = shalt.err (!%p372_p1)
}
  0x22   :  { %42 = dma.hbm_to_vmem [thread:$0]  %s498_s3, 1024, %s37_s12, [#allocation6], %s405_s7, %s405_s7, %s406_s8  }
  0x23   :  { %398 = dma.done.wait [#allocation3], 256  }
  0x24   :  { %399 = vsyncadd [#allocation3], 4294967040 }
  0x25   :  { %400 = dma.done.wait [#allocation6], 1024  }
  0x26   :  { %401 = vsyncadd [#allocation6], 4294966272  ;;  %v408_v0 = vmov 0.0   ;;  %vm409_vm0 = vmmov 0   ;;  %v322_v1 = vld [vmem:[#allocation2] sm:$0xff]   ;;  %v323_v2 = vld [vmem:[#allocation2 + $0x8] sm:$0xff]  }
  0x27   :  { %286 = vmatprep.subr.bf16.mxu0 %v408_v0  ;;  %290 = vmatprep.mubr.msk.bf16.mxu0 %vm409_vm0, %v408_v0  ;;  %v324_v3 = vld [vmem:[#allocation5] sm:$0xff]   ;;  %vm76_vm1 = vcmask 261120   ;;  %v325_v4 = vld [vmem:[#allocation5 + $0x8] sm:$0xff]   ;;  %v52_v5 = vld [vmem:[%s495_s0] sm:$0xf]  ;;  %s410_s26 = smov [#allocation7]  }
  0x28   :  { %294 = vmatprep.subr.bf16.mxu1 %v408_v0  ;;  %310 = vmatprep.mubr.msk.bf16.mxu1 %vm409_vm0, %v408_v0  ;;  %v326_v6 = vld [vmem:[#allocation5 + $0x10] sm:$0xff]   ;;  %v327_v7 = vld [vmem:[#allocation5 + $0x18] sm:$0xff]   ;;  %v328_v8 = vld [vmem:[#allocation5 + $0x20] sm:$0xff]   ;;  %s247_s27 = sshll.u32 %s410_s26, 4  ;;  %vm233_vm2 = vcmask 39936   ;;  %s248_s27 = int_to_ptr.vmem [resolvable:$true] %s247_s27 }
  0x29   :  { %287 = vmatpush3.bf16.msra.mxu0 %v322_v1  ;;  %295 = vmatpush3.bf16.msra.mxu1 %v324_v3  ;;  %v329_v9 = vld [vmem:[#allocation5 + $0x28] sm:$0xff]   ;;  %v330_v10 = vld [vmem:[#allocation5 + $0x30] sm:$0xff]   ;;  %v331_v11 = vld [vmem:[#allocation5 + $0x38] sm:$0xff]   ;;  %s376_s28 = scalar_lea.vmem %s248_s27, 128  ;;  %p381_p3 = scmp.lt.s32.totalorder %s248_s27, %s248_s27 }
  0x2a   :  { %288 = vmatprep.subr.bf16.mxu0 %v408_v0  ;;  %296 = vmatprep.subr.bf16.mxu1 %v408_v0  ;;  %v261_v12 = vld [vmem:[%s497_s2] ss:$0 sm:$0xff]  ;;  %s411_s2 = smov 123   ;;  %p377_p2 = scmp.ne.s32.totalorder %s248_s27, %s376_s28 }
  0x2b   :  { %v265_v20 = vld [vmem:[%s499_s4] ss:$0 sm:$0xff]  ;;  %p382_p4 = scmp.lt.s32.totalorder %s376_s28, %s376_s28 }
  0x2d   :  { %289 = vmatpush3.bf16.msra.mxu0 %v323_v2  ;;  %297 = vmatpush3.bf16.msra.mxu1 %v325_v4  ;;  %p383_p5 = por %p382_p4, %p381_p3 }
  0x2e   :  { %298 = vmatprep.subr.bf16.mxu1 %v408_v0 }
  0x2f   :  { %p384_p6 = pnand %p383_p5, %p377_p2 }
  0x30   :  { %291 = vmatmul.mubr.msk.bf16.vlgmr.msra.gmra.mrb[0].mxu0 %vm76_vm1, %v52_v5 }
  0x31   :  { %299 = vmatpush3.bf16.msra.mxu1 %v326_v6 }
  0x32   :  { %300 = vmatprep.subr.bf16.mxu1 %v408_v0 }
  0x35   :  { %301 = vmatpush3.bf16.msra.mxu1 %v327_v7 }
  0x36   :  { %302 = vmatprep.subr.bf16.mxu1 %v408_v0 }
  0x39   :  { %303 = vmatpush3.bf16.msra.mxu1 %v328_v8 }
  0x3a   :  { %304 = vmatprep.subr.bf16.mxu1 %v408_v0 }
  0x3d   :  { %305 = vmatpush3.bf16.msra.mxu1 %v329_v9 }
  0x3e   :  { %306 = vmatprep.subr.bf16.mxu1 %v408_v0 }
  0x41   :  { %307 = vmatpush3.bf16.msra.mxu1 %v330_v10 }
  0x42   :  { %308 = vmatprep.subr.bf16.mxu1 %v408_v0 }
  0x45   :  { %309 = vmatpush3.bf16.msra.mxu1 %v331_v11 }
 0x103   :  { %v114_v13 = vpop.f32.mrb[0].mxu0 }
 0x104   :  { %v115_v14 = vadd.f32 %v261_v12, %v114_v13  ;;  %v292_v15 = vpop.f32.mrb[1].mxu0 }
 0x105   :  { %v117_v16 = vpop.f32.mrb[2].mxu0 }
 0x106   :  { %v120_v17 = vmax.f32 %v115_v14, 0.0  ;;  %v293_v18 = vpop.f32.mrb[3].mxu0 }
 0x108   :  { %v121_v19 = vpack.c.bf16 %v120_v17, %v120_v17 }
 0x10a   :  { %311 = vmatmul.mubr.bf16.vlgmr.msra.gmra.mrb[0].mxu1 %v121_v19 }
 0x1dd   :  { %v227_v21 = vpop.f32.mrb[0].mxu1 }
 0x1de   :  { %v228_v22 = vadd.f32 %v265_v20, %v227_v21  ;;  %v312_v23 = vpop.f32.mrb[1].mxu1 }
 0x1df   :  { %v230_v24 = vpop.f32.mrb[2].mxu1 }
 0x1e0   :  { %v313_v25 = vpop.f32.mrb[3].mxu1  ;;  %236 = vrot.lane.b32.xlu0 %v228_v22, %s411_s2  ;;  %234 = vst.msk [vmem:[#allocation7] sm:$0xff] %vm233_vm2, %v228_v22 }
 0x1e1   :  { %387 = shalt.err (!%p384_p6)
}
 0x1e2   :  { %s388_s30 = scalar_lea.hbm %s500_s5, 128 }
 0x1e3   :  { %p389_p7 = scmp.ne.s32.totalorder %s500_s5, %s388_s30  ;;  %p392_p8 = scmp.lt.u32.totalorder %s388_s30, %s500_s5 }
 0x1e5   :  { %p394_p9 = pnand %p392_p8, %p389_p7 }
 0x1e7   :  { %397 = shalt.err (!%p394_p9)
}
 0x1e8   :  { %250 = dma.vmem_to_hbm [thread:$0]  %s248_s27, 128, %s500_s5, [#allocation4]   ;;  %vm239_vm3 = vcmask 23552  }
 0x252   :  { %v237_v26 = vpop.permute.xlu0 %236 }
 0x253   :  { %240 = vst.msk [vmem:[%s501_s6] sm:$0xff] %vm239_vm3, %v237_v26 }
 0x254   :  { %402 = dma.done.wait [#allocation4], 128  }
 0x255   :  { %403 = vsyncadd [#allocation4], 4294967168 }
 0x256   :  { %258 = vsyncpa [#allocation3], 1 }
 0x257   :  { %259 = vsyncpa [#allocation6], 1 }
 0x258   :  { %260 = vsyncpa [#allocation4], 1 }

</bundles_post_ra>
